<compile_context>
chip_gen: v7x
topology: tpu7x:2x2x1
jax: 0.10.0
libtpu: 0.0.40
codegen_flags: <defaults>
</compile_context>

<pallas_src>
import functools

import jax
import jax.numpy as jnp
from jax import lax
from jax.experimental import pallas as pl
from jax.experimental.pallas import tpu as pltpu


def _ceil_to(n, m):
    return ((n + m - 1) // m) * m


def _dsconv_kernel(x_ref, dww_ref, dwb_ref, pww_ref, pwb_ref, *rest,
                   C, NC, K1, d1, K2, d2, WROW, L1P, L2P, use_mask, use_mxu):
    """One batch element, flat-row layout.

    x_ref   : (C, LinP)            zero-padded input, rows of width WROW flattened on lanes
    dww_ref : (C, K1*K1)           depthwise weights (per-channel taps)
    dwb_ref : (C, 1)               depthwise bias
    pww_ref : (NC, K2*K2*C)        pointwise weights, column index = tap*C + c
    pwb_ref : (NC, 1)              pointwise bias
    rest    : (mask_ref?, out_ref) mask (1, L1P) only when pw_padding > 0
    out_ref : (NC, L2P)            lane-dense flat output (cropped in the wrapper)
    """
    if use_mask:
        mask_ref, out_ref = rest
    else:
        (out_ref,) = rest

    # ---------------- depthwise conv (groups == C): shift + FMA per tap ----------------
    acc = jnp.zeros((C, L1P), jnp.float32)
    for kh in range(K1):
        row_off = kh * d1 * WROW
        for kw in range(K1):
            off = row_off + kw * d1                    # static lane offset for this tap
            t = kh * K1 + kw
            acc = acc + dww_ref[:, t:t + 1] * x_ref[:, off:off + L1P]
    acc = acc + dwb_ref[...]
    if use_mask:                                       # only when pw_padding > 0
        acc = acc * mask_ref[...]

    # ---------------- pointwise conv (groups == 1): one contraction over C*K2*K2 -------
    if use_mxu:
        if K2 == 1:
            rhs = acc[:, :L2P]
        else:
            slices = []
            for kh2 in range(K2):
                for kw2 in range(K2):
                    off2 = kh2 * d2 * WROW + kw2 * d2
                    slices.append(acc[:, off2:off2 + L2P])
            rhs = jnp.concatenate(slices, axis=0)      # (K2*K2*C, L2P)
        out = jnp.dot(pww_ref[...], rhs, preferred_element_type=jnp.float32)
    else:
        # Tiny contraction: VPU broadcast-FMAs, skip MXU latency entirely.
        out = jnp.zeros((NC, L2P), jnp.float32)
        for kh2 in range(K2):
            for kw2 in range(K2):
                off2 = kh2 * d2 * WROW + kw2 * d2
                t2 = kh2 * K2 + kw2
                xs2 = acc[:, off2:off2 + L2P]
                for c in range(C):
                    k = t2 * C + c
                    out = out + pww_ref[:, k:k + 1] * xs2[c:c + 1, :]

    out_ref[...] = (out + pwb_ref[...]).astype(out_ref.dtype)


def depthwise_separable_conv(x, dw_w, dw_b, pw_w, pw_b, *,
                             dw_padding, dw_dilation=1, pw_padding=0, pw_dilation=1):
    """x: (B, C, H, W);  dw_w: (C, 1, K1, K1);  pw_w: (NC, C, K2, K2)."""
    B, C, H, W = x.shape
    C_, one, K1h, K1w = dw_w.shape
    NC, Cpw, K2h, K2w = pw_w.shape
    assert C_ == C and one == 1 and Cpw == C and K1h == K1w and K2h == K2w
    K1, K2 = K1h, K2h
    p1, d1, p2, d2 = dw_padding, dw_dilation, pw_padding, pw_dilation

    Hp, Wp = H + 2 * p1, W + 2 * p1
    H1, W1 = Hp - d1 * (K1 - 1), Wp - d1 * (K1 - 1)            # depthwise output
    H2, W2 = H1 + 2 * p2 - d2 * (K2 - 1), W1 + 2 * p2 - d2 * (K2 - 1)  # pointwise output
    assert H1 > 0 and W1 > 0 and H2 > 0 and W2 > 0, "non-positive conv output size"

    # Flat-row geometry: each logical row has width WROW; a left/top margin of p2
    # zeros gives the pointwise conv its padding ring inside the same flat layout.
    mT = mL = p2
    WROW = max(mL + Wp, W1 + 2 * p2)
    NR_in = mT + Hp

    L2 = H2 * WROW
    L2P = _ceil_to(L2, 128)                                    # lane-dense output length
    L1 = (H1 + 2 * p2) * WROW
    L1P = _ceil_to(max(L1, L2P + (K2 - 1) * d2 * (WROW + 1)), 128)
    LinP = _ceil_to(max(NR_in * WROW, L1P + (K1 - 1) * d1 * (WROW + 1)), 128)

    # ---- glue (layout only): embed x into zero rows, flatten, re-layout weights ----
    x_row = jnp.zeros((B, C, NR_in, WROW), x.dtype)
    x_row = x_row.at[:, :, mT + p1:mT + p1 + H, mL + p1:mL + p1 + W].set(x)
    x_flat = x_row.reshape(B, C, NR_in * WROW)
    x_flat = jnp.pad(x_flat, ((0, 0), (0, 0), (0, LinP - NR_in * WROW)))

    dww = dw_w[:, 0].reshape(C, K1 * K1)                                   # (C, taps)
    dwb = dw_b.reshape(C, 1)
    pww = jnp.transpose(pw_w, (0, 2, 3, 1)).reshape(NC, K2 * K2 * C)       # col = tap*C + c
    pwb = pw_b.reshape(NC, 1)

    use_mask = p2 > 0
    use_mxu = (C * K2 * K2) >= 16

    inputs = [x_flat, dww, dwb, pww, pwb]
    in_specs = [
        pl.BlockSpec((pl.Squeezed(), C, LinP), lambda b: (b, 0, 0)),
        pl.BlockSpec((C, K1 * K1), lambda b: (0, 0)),
        pl.BlockSpec((C, 1), lambda b: (0, 0)),
        pl.BlockSpec((NC, K2 * K2 * C), lambda b: (0, 0)),
        pl.BlockSpec((NC, 1), lambda b: (0, 0)),
    ]
    if use_mask:
        idx = jnp.arange(L1P)
        row, col = idx // WROW, idx % WROW
        valid = (row >= mT) & (row < mT + H1) & (col >= mL) & (col < mL + W1)
        inputs.append(valid.astype(jnp.float32).reshape(1, L1P))
        in_specs.append(pl.BlockSpec((1, L1P), lambda b: (0, 0)))

    kernel = functools.partial(
        _dsconv_kernel, C=C, NC=NC, K1=K1, d1=d1, K2=K2, d2=d2,
        WROW=WROW, L1P=L1P, L2P=L2P, use_mask=use_mask, use_mxu=use_mxu)

    out_flat = pl.pallas_call(
        kernel,
        out_shape=jax.ShapeDtypeStruct((B, NC, L2P), jnp.float32),
        grid_spec=pltpu.PrefetchScalarGridSpec(
            num_scalar_prefetch=0,
            grid=(B,),
            in_specs=in_specs,
            out_specs=pl.BlockSpec((pl.Squeezed(), NC, L2P), lambda b: (b, 0, 0)),
        ),
        compiler_params=pltpu.CompilerParams(dimension_semantics=("parallel",)),
    )(*inputs)

    # glue: crop the lane-dense flat result back to (B, NC, H2, W2)
    out = out_flat[:, :, :H2 * WROW].reshape(B, NC, H2, WROW)[:, :, :, :W2]
    return out


def _reference(x, dw_w, dw_b, pw_w, pw_b, dw_padding, dw_dilation, pw_padding, pw_dilation):
    out = lax.conv_general_dilated(
        x, dw_w, window_strides=(1, 1),
        padding=[(dw_padding, dw_padding)] * 2,
        rhs_dilation=(dw_dilation, dw_dilation),
        dimension_numbers=("NCHW", "OIHW", "NCHW"),
        feature_group_count=x.shape[1])
    out = out + dw_b.reshape(1, -1, 1, 1)
    out = lax.conv_general_dilated(
        out, pw_w, window_strides=(1, 1),
        padding=[(pw_padding, pw_padding)] * 2,
        rhs_dilation=(pw_dilation, pw_dilation),
        dimension_numbers=("NCHW", "OIHW", "NCHW"))
    return out + pw_b.reshape(1, -1, 1, 1)


if __name__ == "__main__":
    # Module config: DepthwiseSeparableConv(n_channels=4, n_classes=8,
    #   dw_kernel_size=3, dw_padding=1, pw_kernel_size=1, pw_padding=0)
    B, C, H, W = 2, 4, 16, 16
    NC = 8
    dw_k, dw_pad, dw_dil = 3, 1, 1
    pw_k, pw_pad, pw_dil = 1, 0, 1

    key = jax.random.PRNGKey(0)
    k1, k2, k3, k4, k5 = jax.random.split(key, 5)
    x = jax.random.normal(k1, (B, C, H, W), jnp.float32)

    bnd_dw = 1.0 / (1 * dw_k * dw_k) ** 0.5
    dw_w = jax.random.uniform(k2, (C, 1, dw_k, dw_k), jnp.float32, -bnd_dw, bnd_dw)
    dw_b = jax.random.uniform(k3, (C,), jnp.float32, -bnd_dw, bnd_dw)
    bnd_pw = 1.0 / (C * pw_k * pw_k) ** 0.5
    pw_w = jax.random.uniform(k4, (NC, C, pw_k, pw_k), jnp.float32, -bnd_pw, bnd_pw)
    pw_b = jax.random.uniform(k5, (NC,), jnp.float32, -bnd_pw, bnd_pw)

    out = depthwise_separable_conv(
        x, dw_w, dw_b, pw_w, pw_b,
        dw_padding=dw_pad, dw_dilation=dw_dil,
        pw_padding=pw_pad, pw_dilation=pw_dil)
    out = jax.block_until_ready(out)
    ref = _reference(x, dw_w, dw_b, pw_w, pw_b, dw_pad, dw_dil, pw_pad, pw_dil)
    assert out.shape == (B, NC, H, W), out.shape
    assert jnp.allclose(out, ref, atol=1e-4, rtol=1e-4), float(jnp.abs(out - ref).max())

    # Second config: dilated depthwise (padding=2, dilation=2), same 1x1 pointwise.
    out2 = depthwise_separable_conv(
        x, dw_w, dw_b, pw_w, pw_b,
        dw_padding=2, dw_dilation=2, pw_padding=0, pw_dilation=1)
    out2 = jax.block_until_ready(out2)
    ref2 = _reference(x, dw_w, dw_b, pw_w, pw_b, 2, 2, 0, 1)
    assert out2.shape == ref2.shape == (B, NC, H, W)
    assert jnp.allclose(out2, ref2, atol=1e-4, rtol=1e-4), float(jnp.abs(out2 - ref2).max())

    print("KERNEL_OK")
</pallas_src>

<mosaic_0001>
module attributes {stable_mosaic.version = 11 : i64} {
  func.func @_dsconv_kernel(%arg0: i32, %arg1: memref<1x4x512xf32, #tpu.memory_space<vmem>>, %arg2: memref<4x9xf32, #tpu.memory_space<vmem>>, %arg3: memref<4x1xf32, #tpu.memory_space<vmem>>, %arg4: memref<8x4xf32, #tpu.memory_space<vmem>>, %arg5: memref<8x1xf32, #tpu.memory_space<vmem>>, %arg6: memref<1x8x384xf32, #tpu.memory_space<vmem>>) attributes {dimension_semantics = [#tpu.dimension_semantics<parallel>], iteration_bounds = array<i64: 2>, scalar_prefetch = 0 : i64, scratch_operands = 0 : i64, tpu.core_type = #tpu.core_type<tc>, window_params = [{transform_indices = @transform_0, window_bounds = array<i64: 1, 4, 512>}, {pipeline_mode = #tpu.pipeline_mode<synchronous>, transform_indices = @transform_1, window_bounds = array<i64: 4, 9>}, {pipeline_mode = #tpu.pipeline_mode<synchronous>, transform_indices = @transform_2, window_bounds = array<i64: 4, 1>}, {pipeline_mode = #tpu.pipeline_mode<synchronous>, transform_indices = @transform_3, window_bounds = array<i64: 8, 4>}, {pipeline_mode = #tpu.pipeline_mode<synchronous>, transform_indices = @transform_4, window_bounds = array<i64: 8, 1>}, {transform_indices = @transform_5, window_bounds = array<i64: 1, 8, 384>}]} {
    %cst = arith.constant 0.000000e+00 : f32
    %0 = vector.broadcast %cst : f32 to vector<4x384xf32>
    %c0 = arith.constant 0 : index
    %c0_0 = arith.constant 0 : index
    %1 = vector.load %arg2[%c0, %c0_0] : memref<4x9xf32, #tpu.memory_space<vmem>>, vector<4x1xf32>
    %c0_1 = arith.constant 0 : index
    %c0_2 = arith.constant 0 : index
    %c0_3 = arith.constant 0 : index
    %2 = vector.load %arg1[%c0_1, %c0_2, %c0_3] : memref<1x4x512xf32, #tpu.memory_space<vmem>>, vector<1x4x384xf32>
    %3 = vector.shape_cast %2 : vector<1x4x384xf32> to vector<4x384xf32>
    %4 = vector.broadcast %1 : vector<4x1xf32> to vector<4x384xf32>
    %5 = arith.mulf %4, %3 : vector<4x384xf32>
    %6 = arith.addf %0, %5 : vector<4x384xf32>
    %c0_4 = arith.constant 0 : index
    %c1 = arith.constant 1 : index
    %7 = vector.load %arg2[%c0_4, %c1] : memref<4x9xf32, #tpu.memory_space<vmem>>, vector<4x1xf32>
    %c0_5 = arith.constant 0 : index
    %c0_6 = arith.constant 0 : index
    %c1_7 = arith.constant 1 : index
    %8 = vector.load %arg1[%c0_5, %c0_6, %c1_7] : memref<1x4x512xf32, #tpu.memory_space<vmem>>, vector<1x4x384xf32>
    %9 = vector.shape_cast %8 : vector<1x4x384xf32> to vector<4x384xf32>
    %10 = vector.broadcast %7 : vector<4x1xf32> to vector<4x384xf32>
    %11 = arith.mulf %10, %9 : vector<4x384xf32>
    %12 = arith.addf %6, %11 : vector<4x384xf32>
    %c0_8 = arith.constant 0 : index
    %c2 = arith.constant 2 : index
    %13 = vector.load %arg2[%c0_8, %c2] : memref<4x9xf32, #tpu.memory_space<vmem>>, vector<4x1xf32>
    %c0_9 = arith.constant 0 : index
    %c0_10 = arith.constant 0 : index
    %c2_11 = arith.constant 2 : index
    %14 = vector.load %arg1[%c0_9, %c0_10, %c2_11] : memref<1x4x512xf32, #tpu.memory_space<vmem>>, vector<1x4x384xf32>
    %15 = vector.shape_cast %14 : vector<1x4x384xf32> to vector<4x384xf32>
    %16 = vector.broadcast %13 : vector<4x1xf32> to vector<4x384xf32>
    %17 = arith.mulf %16, %15 : vector<4x384xf32>
    %18 = arith.addf %12, %17 : vector<4x384xf32>
    %c0_12 = arith.constant 0 : index
    %c3 = arith.constant 3 : index
    %19 = vector.load %arg2[%c0_12, %c3] : memref<4x9xf32, #tpu.memory_space<vmem>>, vector<4x1xf32>
    %c0_13 = arith.constant 0 : index
    %c0_14 = arith.constant 0 : index
    %c18 = arith.constant 18 : index
    %20 = vector.load %arg1[%c0_13, %c0_14, %c18] : memref<1x4x512xf32, #tpu.memory_space<vmem>>, vector<1x4x384xf32>
    %21 = vector.shape_cast %20 : vector<1x4x384xf32> to vector<4x384xf32>
    %22 = vector.broadcast %19 : vector<4x1xf32> to vector<4x384xf32>
    %23 = arith.mulf %22, %21 : vector<4x384xf32>
    %24 = arith.addf %18, %23 : vector<4x384xf32>
    %c0_15 = arith.constant 0 : index
    %c4 = arith.constant 4 : index
    %25 = vector.load %arg2[%c0_15, %c4] : memref<4x9xf32, #tpu.memory_space<vmem>>, vector<4x1xf32>
    %c0_16 = arith.constant 0 : index
    %c0_17 = arith.constant 0 : index
    %c19 = arith.constant 19 : index
    %26 = vector.load %arg1[%c0_16, %c0_17, %c19] : memref<1x4x512xf32, #tpu.memory_space<vmem>>, vector<1x4x384xf32>
    %27 = vector.shape_cast %26 : vector<1x4x384xf32> to vector<4x384xf32>
    %28 = vector.broadcast %25 : vector<4x1xf32> to vector<4x384xf32>
    %29 = arith.mulf %28, %27 : vector<4x384xf32>
    %30 = arith.addf %24, %29 : vector<4x384xf32>
    %c0_18 = arith.constant 0 : index
    %c5 = arith.constant 5 : index
    %31 = vector.load %arg2[%c0_18, %c5] : memref<4x9xf32, #tpu.memory_space<vmem>>, vector<4x1xf32>
    %c0_19 = arith.constant 0 : index
    %c0_20 = arith.constant 0 : index
    %c20 = arith.constant 20 : index
    %32 = vector.load %arg1[%c0_19, %c0_20, %c20] : memref<1x4x512xf32, #tpu.memory_space<vmem>>, vector<1x4x384xf32>
    %33 = vector.shape_cast %32 : vector<1x4x384xf32> to vector<4x384xf32>
    %34 = vector.broadcast %31 : vector<4x1xf32> to vector<4x384xf32>
    %35 = arith.mulf %34, %33 : vector<4x384xf32>
    %36 = arith.addf %30, %35 : vector<4x384xf32>
    %c0_21 = arith.constant 0 : index
    %c6 = arith.constant 6 : index
    %37 = vector.load %arg2[%c0_21, %c6] : memref<4x9xf32, #tpu.memory_space<vmem>>, vector<4x1xf32>
    %c0_22 = arith.constant 0 : index
    %c0_23 = arith.constant 0 : index
    %c36 = arith.constant 36 : index
    %38 = vector.load %arg1[%c0_22, %c0_23, %c36] : memref<1x4x512xf32, #tpu.memory_space<vmem>>, vector<1x4x384xf32>
    %39 = vector.shape_cast %38 : vector<1x4x384xf32> to vector<4x384xf32>
    %40 = vector.broadcast %37 : vector<4x1xf32> to vector<4x384xf32>
    %41 = arith.mulf %40, %39 : vector<4x384xf32>
    %42 = arith.addf %36, %41 : vector<4x384xf32>
    %c0_24 = arith.constant 0 : index
    %c7 = arith.constant 7 : index
    %43 = vector.load %arg2[%c0_24, %c7] : memref<4x9xf32, #tpu.memory_space<vmem>>, vector<4x1xf32>
    %c0_25 = arith.constant 0 : index
    %c0_26 = arith.constant 0 : index
    %c37 = arith.constant 37 : index
    %44 = vector.load %arg1[%c0_25, %c0_26, %c37] : memref<1x4x512xf32, #tpu.memory_space<vmem>>, vector<1x4x384xf32>
    %45 = vector.shape_cast %44 : vector<1x4x384xf32> to vector<4x384xf32>
    %46 = vector.broadcast %43 : vector<4x1xf32> to vector<4x384xf32>
    %47 = arith.mulf %46, %45 : vector<4x384xf32>
    %48 = arith.addf %42, %47 : vector<4x384xf32>
    %c0_27 = arith.constant 0 : index
    %c8 = arith.constant 8 : index
    %49 = vector.load %arg2[%c0_27, %c8] : memref<4x9xf32, #tpu.memory_space<vmem>>, vector<4x1xf32>
    %c0_28 = arith.constant 0 : index
    %c0_29 = arith.constant 0 : index
    %c38 = arith.constant 38 : index
    %50 = vector.load %arg1[%c0_28, %c0_29, %c38] : memref<1x4x512xf32, #tpu.memory_space<vmem>>, vector<1x4x384xf32>
    %51 = vector.shape_cast %50 : vector<1x4x384xf32> to vector<4x384xf32>
    %52 = vector.broadcast %49 : vector<4x1xf32> to vector<4x384xf32>
    %53 = arith.mulf %52, %51 : vector<4x384xf32>
    %54 = arith.addf %48, %53 : vector<4x384xf32>
    %c0_30 = arith.constant 0 : index
    %c0_31 = arith.constant 0 : index
    %55 = vector.load %arg3[%c0_30, %c0_31] : memref<4x1xf32, #tpu.memory_space<vmem>>, vector<4x1xf32>
    %56 = vector.broadcast %55 : vector<4x1xf32> to vector<4x384xf32>
    %57 = arith.addf %54, %56 : vector<4x384xf32>
    %cst_32 = arith.constant 0.000000e+00 : f32
    %58 = vector.broadcast %cst_32 : f32 to vector<8x384xf32>
    %c0_33 = arith.constant 0 : index
    %c0_34 = arith.constant 0 : index
    %59 = vector.load %arg4[%c0_33, %c0_34] : memref<8x4xf32, #tpu.memory_space<vmem>>, vector<8x1xf32>
    %60 = vector.extract_strided_slice %57 {offsets = [0, 0], sizes = [1, 384], strides = [1, 1]} : vector<4x384xf32> to vector<1x384xf32>
    %61 = vector.broadcast %59 : vector<8x1xf32> to vector<8x384xf32>
    %62 = vector.broadcast %60 : vector<1x384xf32> to vector<8x384xf32>
    %63 = arith.mulf %61, %62 : vector<8x384xf32>
    %64 = arith.addf %58, %63 : vector<8x384xf32>
    %c0_35 = arith.constant 0 : index
    %c1_36 = arith.constant 1 : index
    %65 = vector.load %arg4[%c0_35, %c1_36] : memref<8x4xf32, #tpu.memory_space<vmem>>, vector<8x1xf32>
    %66 = vector.extract_strided_slice %57 {offsets = [1, 0], sizes = [1, 384], strides = [1, 1]} : vector<4x384xf32> to vector<1x384xf32>
    %67 = vector.broadcast %65 : vector<8x1xf32> to vector<8x384xf32>
    %68 = vector.broadcast %66 : vector<1x384xf32> to vector<8x384xf32>
    %69 = arith.mulf %67, %68 : vector<8x384xf32>
    %70 = arith.addf %64, %69 : vector<8x384xf32>
    %c0_37 = arith.constant 0 : index
    %c2_38 = arith.constant 2 : index
    %71 = vector.load %arg4[%c0_37, %c2_38] : memref<8x4xf32, #tpu.memory_space<vmem>>, vector<8x1xf32>
    %72 = vector.extract_strided_slice %57 {offsets = [2, 0], sizes = [1, 384], strides = [1, 1]} : vector<4x384xf32> to vector<1x384xf32>
    %73 = vector.broadcast %71 : vector<8x1xf32> to vector<8x384xf32>
    %74 = vector.broadcast %72 : vector<1x384xf32> to vector<8x384xf32>
    %75 = arith.mulf %73, %74 : vector<8x384xf32>
    %76 = arith.addf %70, %75 : vector<8x384xf32>
    %c0_39 = arith.constant 0 : index
    %c3_40 = arith.constant 3 : index
    %77 = vector.load %arg4[%c0_39, %c3_40] : memref<8x4xf32, #tpu.memory_space<vmem>>, vector<8x1xf32>
    %78 = vector.extract_strided_slice %57 {offsets = [3, 0], sizes = [1, 384], strides = [1, 1]} : vector<4x384xf32> to vector<1x384xf32>
    %79 = vector.broadcast %77 : vector<8x1xf32> to vector<8x384xf32>
    %80 = vector.broadcast %78 : vector<1x384xf32> to vector<8x384xf32>
    %81 = arith.mulf %79, %80 : vector<8x384xf32>
    %82 = arith.addf %76, %81 : vector<8x384xf32>
    %c0_41 = arith.constant 0 : index
    %c0_42 = arith.constant 0 : index
    %83 = vector.load %arg5[%c0_41, %c0_42] : memref<8x1xf32, #tpu.memory_space<vmem>>, vector<8x1xf32>
    %84 = vector.broadcast %83 : vector<8x1xf32> to vector<8x384xf32>
    %85 = arith.addf %82, %84 : vector<8x384xf32>
    %c0_43 = arith.constant 0 : index
    %c0_44 = arith.constant 0 : index
    %c0_45 = arith.constant 0 : index
    %86 = vector.load %arg6[%c0_43, %c0_44, %c0_45] : memref<1x8x384xf32, #tpu.memory_space<vmem>>, vector<1x8x384xf32>
    %87 = vector.shape_cast %86 : vector<1x8x384xf32> to vector<8x384xf32>
    %88 = vector.shape_cast %85 : vector<8x384xf32> to vector<1x8x384xf32>
    tpu.vector_store %arg6[%c0_43, %c0_44, %c0_45], %88 {strides = array<i32>} : memref<1x8x384xf32, #tpu.memory_space<vmem>>, vector<1x8x384xf32>,
    return
  }
  func.func @transform_0(%arg0: i32) -> (i32, i32, i32) {
    %c0_i32 = arith.constant 0 : i32
    %c0_i32_0 = arith.constant 0 : i32
    %c0_i32_1 = arith.constant 0 : i32
    return %arg0, %c0_i32, %c0_i32_0 : i32, i32, i32
  }
  func.func @transform_1(%arg0: i32) -> (i32, i32) {
    %c0_i32 = arith.constant 0 : i32
    %c0_i32_0 = arith.constant 0 : i32
    %c0_i32_1 = arith.constant 0 : i32
    return %c0_i32, %c0_i32_0 : i32, i32
  }
  func.func @transform_2(%arg0: i32) -> (i32, i32) {
    %c0_i32 = arith.constant 0 : i32
    %c0_i32_0 = arith.constant 0 : i32
    %c0_i32_1 = arith.constant 0 : i32
    return %c0_i32, %c0_i32_0 : i32, i32
  }
  func.func @transform_3(%arg0: i32) -> (i32, i32) {
    %c0_i32 = arith.constant 0 : i32
    %c0_i32_0 = arith.constant 0 : i32
    %c0_i32_1 = arith.constant 0 : i32
    return %c0_i32, %c0_i32_0 : i32, i32
  }
  func.func @transform_4(%arg0: i32) -> (i32, i32) {
    %c0_i32 = arith.constant 0 : i32
    %c0_i32_0 = arith.constant 0 : i32
    %c0_i32_1 = arith.constant 0 : i32
    return %c0_i32, %c0_i32_0 : i32, i32
  }
  func.func @transform_5(%arg0: i32) -> (i32, i32, i32) {
    %c0_i32 = arith.constant 0 : i32
    %c0_i32_0 = arith.constant 0 : i32
    %c0_i32_1 = arith.constant 0 : i32
    return %arg0, %c0_i32, %c0_i32_0 : i32, i32, i32
  }
}

</mosaic_0001>

<bundles_post_ra>
// kernel: tpu_custom_call.1
= control target key start
LH: loop header
LB: loop body
LE: loop exit
PB: predicated region body
PF: predicated region fallthrough
CT: control target
= control target key end

     0   :  { %10 = vsyncpa [#allocation3], 0  ;;  %s1272_s0 = inlined_call_operand.hbm [shape: f32[2,4,512], index: 0, kind: input, shape index: {}]   ;;  %s1273_s1 = inlined_call_operand.vmem [shape: f32[4,9], index: 1, kind: input, shape index: {}]   ;;  %s1274_s2 = inlined_call_operand.vmem [shape: f32[4,1], index: 2, kind: input, shape index: {}]   ;;  %s1275_s3 = inlined_call_operand.vmem [shape: f32[8,4], index: 3, kind: input, shape index: {}]   ;;  %s1276_s4 = inlined_call_operand.vmem [shape: f32[8,1], index: 4, kind: input, shape index: {}]   ;;  %s1277_s5 = inlined_call_operand.hbm [shape: f32[2,8,384], index: 5, kind: output, shape index: {}]  }
   0x1   :  { %12 = vsyncpa [#allocation3 + $0x1], 0 }
   0x2   :  { %13 = vsyncpa [#allocation4], 0 }
   0x3   :  { %15 = vsyncpa [#allocation4 + $0x1], 0  ;;  %s958_s18 = smov 0   ;;  %s960_s19 = smov 0  }
   0x4   :  { %s962_s20 = smov 0   ;;  %s964_s21 = smov 0  }
   0x5 LB: > { %s979_s22 = sadd.s32 4294967295, %s907_s21   ;;  %s718_s23 = sadd.s32 4294967294, %s907_s21   ;;  %s907_s21 = sphi %s964_s21, %s1292_s21   ;;  %s903_s20 = sphi %s962_s20, %s1291_s20   ;;  %s899_s19 = sphi %s960_s19, %s1290_s19   ;;  %s895_s18 = sphi %s958_s18, %s1289_s18  }
   0x6   : > { %s983_s24 = sadd.s32 1, %s907_s21   ;;  %s28_s25 = sadd.s32 1, %s903_s20 }
   0x7   : > { %s25_s26 = ssub.s32 %s907_s21, %s983_s24  ;;  %p35_p0 = scmp.ne.s32.totalorder %s903_s20, %s899_s19 }
   0x8   : > { %p26_p1 = scmp.eq.s32.totalorder %s25_s26, 0  ;;  %p36_p2 = scmp.eq.s32.totalorder %s907_s21, 0 }
   0x9   : > { %p41_p3 = scmp.ne.s32.totalorder %s899_s19, %s895_s18  ;;  %p42_p4 = scmp.eq.s32.totalorder %s979_s22, 0 }
   0xa   : > { %s995_s27 = scalar_select %p26_p1, %s903_s20, %s28_s25  }
   0xb   : > { %p997_p5 = por %p36_p2, %p35_p0  ;;  %p1001_p6 = por %p42_p4, %p41_p3 }
   0xc   : > { %p149_p7 = scmp.eq.s32.totalorder %s979_s22, 1  ;;  %p155_p8 = scmp.eq.s32.totalorder %s718_s23, 1 }
   0xd   : > { %p744_p10 = scmp.lt.s32.totalorder %s907_s21, 2  ;;  %s187_s7 = sand.u32 1, %s903_s20  }
   0xe   : > { %p1008_p11 = por %p149_p7, %p35_p0  ;;  %p1012_p12 = por %p155_p8, %p41_p3 }
   0xf   : > { %s729_s8 = sshll.u32 %s907_s21, 8  ;;  %s721_s9 = sshll.u32 %s187_s7, 4 }
  0x10   : > { %s1281_s30 = scalar_select %p1008_p11, 1, 0 }
  0x11   : > { %s1282_s6 = scalar_select %p1012_p12, 1, 0 }
  0x12   : > { %s1021_s12 = scalar_lea.hbm %s1272_s0, %s729_s8  ;;  %s191_s13 = scalar_lea.vmem [#allocation2], %s721_s9 }
  0x13   : > { %s199_s14 = sshll.u32 %s191_s13, 4  ;;  %p1025_p13 = pnand %p744_p10, %p997_p5  ;;  %s1029_s14 = int_to_ptr.vmem [resolvable:$true] %s199_s14 }
  0x14   : > { %s188_s16 = scalar_lea.sflag [#allocation3], %s187_s7  ;;  %s811_s17 = scalar_lea.hbm %s1021_s12, 256 }
  0x15   : > { %p812_p2 = scmp.ne.s32.totalorder %s1021_s12, %s811_s17  ;;  %p813_p3 = pneg %p1025_p13 }
  0x16   : > { %s816_s26 = scalar_lea.hbm %s1272_s0, 512  ;;  %p817_p5 = scmp.lt.u32.totalorder %s1021_s12, %s1272_s0 }
  0x17   : > { %p814_p4 = pnand %p813_p3, %p812_p2  ;;  %p818_p8 = scmp.lt.u32.totalorder %s816_s26, %s811_s17 }
  0x18   : > { %p820_p9 = scmp.lt.u32.totalorder %s811_s17, %s1021_s12 }
  0x19   : > { %p815_p7 = pneg %p814_p4  ;;  %p819_p10 = por %p818_p8, %p817_p5 }
  0x1b   : > { %p821_p0 = por %p820_p9, %p819_p10 }
  0x1d   : > { %p822_p1 = pnand %p821_p0, %p815_p7 }
  0x1f   : > { %825 = shalt.err (!%p822_p1)
}
  0x20   : > { %s826_s7 = scalar_lea.vmem %s1029_s14, 256  ;;  %s909_s9 = smov [#allocation2]  }
  0x21   : > { %p827_p2 = scmp.ne.s32.totalorder %s1029_s14, %s826_s7  ;;  %s831_s10 = sshll.u32 %s909_s9, 4  ;;  %s832_s10 = int_to_ptr.vmem [resolvable:$false] %s831_s10 }
  0x22   : > { %s833_s11 = scalar_lea.vmem %s832_s10, 512  ;;  %p834_p11 = scmp.lt.s32.totalorder %s1029_s14, %s832_s10 }
  0x23   : > { %p829_p4 = pnand %p827_p2, %p813_p3  ;;  %p835_p5 = scmp.lt.s32.totalorder %s833_s11, %s826_s7 }
  0x25   : > { %p830_p12 = pneg %p829_p4  ;;  %p836_p8 = por %p835_p5, %p834_p11 }
  0x27   : > { %p837_p9 = pnand %p836_p8, %p830_p12 }
  0x29   : > { %840 = shalt.err (!%p837_p9)
}
  0x2a   : > { %739 = dma.hbm_to_vmem [thread:$0]  (!%p1025_p13), %s1021_s12, 256, %s1029_s14, %s188_s16  }
  0x2b   : > { %p1284_p0 = scmp.lt.s32.totalorder %s907_s21, 3  ;;  %p1285_p1 = scmp.ge.s32.totalorder %s907_s21, 1 }
  0x2d   : > { %p205_p3 = pnand %p1285_p1, %p1284_p0 }
  0x2e   : > { %s1063_s13 = sand.u32 (!%p205_p3), 1, %s899_s19  }
  0x2f   : > { %208 = sbr.rel (%p205_p3) target bundleno = 311 (0x137), region = 40  ;;  %s725_s17 = sshll.u32 (!%p205_p3), %s1063_s13, 4 }
  0x30   : > { %s211_s23 = scalar_lea.sflag (!%p205_p3), [#allocation3], %s1063_s13  ;;  %s1067_s25 = scalar_lea.vmem (!%p205_p3), [#allocation2], %s725_s17 }
  0x36   : > { %886 = dma.done.wait (%p1001_p6), %s211_s23, 256  }
  0x37   : > { %888 = vsyncadd (%p1001_p6), %s211_s23, 4294967040  ;;  %v910_v0 = vmov 1   ;;  %v911_v1 = vmov 2   ;;  %v1075_v2 = vld [vmem:[%s1067_s25] sm:$0xff]  ;;  %v1081_v4 = vld [vmem:[%s1067_s25 + $0x8] sm:$0xff]  ;;  %s912_s15 = smov 127  }
  0x38   : > { %795 = vset.pattern.permute.xlu0 %v910_v0  ;;  %796 = vset.pattern.permute.xlu1 %v911_v1  ;;  %v258_v3 = vld [vmem:[%s1273_s1] sm:$0xf]  ;;  %v1086_v5 = vcombine.high %v1081_v4, %v1081_v4  ;;  %v1090_v6 = vcombine.high %v1075_v2, %v1075_v2  ;;  %v913_v7 = vmov 3   ;;  %s914_s29 = smov 126   ;;  %v915_v10 = vmov 4   ;;  %s916_s7 = smov 110  }
  0x39   : > { %270 = vrot.lane.b32.xlu1 %v1075_v2, %s912_s15  ;;  %263 = vperm.xlu0 %795, %v258_v3   ;;  %v291_v8 = vld [vmem:[%s1273_s1] sm:$0xf]  ;;  %v917_v12 = vmov 6   ;;  %v918_v15 = vmov 5   ;;  %s919_s14 = smov 109   ;;  %v920_v16 = vmov 7  }
  0x3a   : > { %v324_v9 = vld [vmem:[%s1273_s1] sm:$0xf]  ;;  %s921_s16 = smov 108   ;;  %v922_v18 = vmov 8   ;;  %v923_v21 = vmov 0   ;;  %s925_s10 = smov 91  }
  0x3b   : > { %v357_v11 = vld [vmem:[%s1273_s1] sm:$0xf]  ;;  %s926_s23 = smov 90   ;;  %vm278_vm0 = vcmask 1039360   ;;  %vm311_vm1 = vcmask 1031168   ;;  %vm344_vm2 = vcmask 900096  }
  0x3c   : > { %v423_v13 = vld [vmem:[%s1273_s1] sm:$0xf]  ;;  %v243_v52 = vld [vmem:[%s1067_s25 + $0x8] sm:$0xf]  ;;  %vm377_vm3 = vcmask 891904   ;;  %vm410_vm4 = vcmask 883712  }
  0x3d   : > { %274 = vrot.lane.b32.xlu1 %v1081_v4, %s912_s15  ;;  %276 = vrot.lane.b32.xlu0 %v1086_v5, %s912_s15  ;;  %v390_v14 = vld [vmem:[%s1273_s1] sm:$0xf]  ;;  %vm443_vm5 = vcmask 752640   ;;  %vm476_vm6 = vcmask 744448   ;;  %vm509_vm7 = vcmask 736256   ;;  %s730_s25 = smul.u32 24, %s1063_s13 }
  0x3e   : > { %797 = vset.pattern.permute.xlu0 %v913_v7  ;;  %v456_v17 = vld [vmem:[%s1273_s1] sm:$0xf]  ;;  %p1286_p11 = scmp.ne.s32.totalorder %s1281_s30, 0  ;;  %s927_s11 = smov [#allocation5]  }
  0x3f   : > { %v489_v19 = vld [vmem:[%s1273_s1] sm:$0xf]  ;;  %s240_s26 = scalar_lea.vmem [#allocation5], %s730_s25  ;;  %s845_s17 = sshll.u32 %s927_s11, 4  ;;  %s846_s17 = int_to_ptr.vmem [resolvable:$false] %s845_s17 }
  0x40   : > { %v241_v20 = vld [vmem:[%s1273_s1] sm:$0xf]  ;;  %s648_s28 = sshll.u32 %s240_s26, 4  ;;  %s1230_s28 = int_to_ptr.vmem [resolvable:$true] %s648_s28 }
  0x41   : > { %272 = vrot.lane.b32.xlu1 %v1090_v6, %s912_s15  ;;  %303 = vrot.lane.b32.xlu0 %v1075_v2, %s914_s29  ;;  %v522_v22 = vld [vmem:[%s1274_s2] sm:$0xf]  ;;  %p848_p7 = scmp.lt.s32.totalorder %s1230_s28, %s846_s17 }
  0x42   : > { %v531_v23 = vld [vmem:[%s1275_s3] sm:$0xff] }
  0x43   : > { %v621_v24 = vld [vmem:[%s1276_s4] sm:$0xff] }
  0x45   : > { %296 = vperm.xlu1 %796, %v291_v8   ;;  %307 = vrot.lane.b32.xlu0 %v1081_v4, %s914_s29 }
  0x49   : > { %305 = vrot.lane.b32.xlu1 %v1090_v6, %s914_s29  ;;  %329 = vperm.xlu0 %797, %v324_v9  }
  0x4a   : > { %798 = vset.pattern.permute.xlu1 %v915_v10 }
  0x4d   : > { %309 = vrot.lane.b32.xlu1 %v1086_v5, %s914_s29  ;;  %336 = vrot.lane.b32.xlu0 %v1075_v2, %s916_s7 }
  0x4e   : > { %800 = vset.pattern.permute.xlu0 %v917_v12 }
  0x51   : > { %362 = vperm.xlu1 %798, %v357_v11   ;;  %340 = vrot.lane.b32.xlu0 %v1081_v4, %s916_s7 }
  0x55   : > { %799 = vset.pattern.permute.xlu1 %v918_v15  ;;  %428 = vperm.xlu0 %800, %v423_v13  }
  0x56   : > { %395 = vperm.xlu1 %799, %v390_v14  }
  0x59   : > { %373 = vrot.lane.b32.xlu0 %v1081_v4, %s919_s14 }
  0x5a   : > { %338 = vrot.lane.b32.xlu1 %v1090_v6, %s916_s7  ;;  %801 = vset.pattern.permute.xlu0 %v920_v16 }
  0x5b   : > { %804 = vset.pattern.permute.xlu1 %v910_v0 }
  0x5d   : > { %461 = vperm.xlu0 %801, %v456_v17  }
  0x5e   : > { %342 = vrot.lane.b32.xlu1 %v1086_v5, %s916_s7  ;;  %s924_s7 = smov 92  }
  0x61   : > { %406 = vrot.lane.b32.xlu0 %v1081_v4, %s921_s16 }
  0x62   : > { %369 = vrot.lane.b32.xlu1 %v1075_v2, %s919_s14  ;;  %802 = vset.pattern.permute.xlu0 %v922_v18 }
  0x65   : > { %494 = vperm.xlu0 %802, %v489_v19  }
  0x66   : > { %371 = vrot.lane.b32.xlu1 %v1090_v6, %s919_s14 }
  0x69   : > { %803 = vset.pattern.permute.xlu0 %v923_v21 }
  0x6a   : > { %375 = vrot.lane.b32.xlu1 %v1086_v5, %s919_s14  ;;  %246 = vperm.xlu0 %803, %v241_v20  }
  0x6e   : > { %402 = vrot.lane.b32.xlu1 %v1075_v2, %s921_s16  ;;  %439 = vrot.lane.b32.xlu0 %v1081_v4, %s924_s7 }
  0x72   : > { %404 = vrot.lane.b32.xlu1 %v1090_v6, %s921_s16  ;;  %468 = vrot.lane.b32.xlu0 %v1075_v2, %s925_s10 }
  0x76   : > { %408 = vrot.lane.b32.xlu1 %v1086_v5, %s921_s16  ;;  %472 = vrot.lane.b32.xlu0 %v1081_v4, %s925_s10  ;;  %s731_s16 = smul.u32 384, %s979_s22  ;;  %s634_s22 = scalar_lea.sflag [#allocation4], %s1063_s13 }
  0x7a   : > { %435 = vrot.lane.b32.xlu1 %v1075_v2, %s924_s7  ;;  %525 = vperm.xlu0 %803, %v522_v22  }
  0x7e   : > { %437 = vrot.lane.b32.xlu1 %v1090_v6, %s924_s7  ;;  %505 = vrot.lane.b32.xlu0 %v1081_v4, %s926_s23 }
  0x82   : > { %441 = vrot.lane.b32.xlu1 %v1086_v5, %s924_s7  ;;  %534 = vperm.xlu0 %803, %v531_v23   ;;  %s1228_s7 = scalar_lea.hbm %s1277_s5, %s731_s16 }
  0x86   : > { %470 = vrot.lane.b32.xlu1 %v1090_v6, %s925_s10  ;;  %805 = vset.pattern.permute.xlu0 %v911_v1 }
  0x87   : > { %578 = vperm.xlu0 %805, %v531_v23  }
  0x8a   : > { %474 = vrot.lane.b32.xlu1 %v1086_v5, %s925_s10  ;;  %s841_s10 = scalar_lea.vmem %s1230_s28, 384 }
  0x8b   : > { %808 = vset.pattern.permute.xlu0 %v923_v21  ;;  %p842_p6 = scmp.ne.s32.totalorder %s1230_s28, %s841_s10 }
  0x8d   : > { %p843_p12 = pnand %p842_p6, %p1286_p11 }
  0x8e   : > { %501 = vrot.lane.b32.xlu1 %v1075_v2, %s926_s23 }
  0x8f   : > { %p844_p13 = pneg %p843_p12 }
  0x92   : > { %503 = vrot.lane.b32.xlu1 %v1090_v6, %s926_s23 }
  0x96   : > { %507 = vrot.lane.b32.xlu1 %v1086_v5, %s926_s23  ;;  %s847_s23 = scalar_lea.vmem %s846_s17, 768 }
  0x97   : > { %p849_p10 = scmp.lt.s32.totalorder %s847_s23, %s841_s10 }
  0x99   : > { %p850_p2 = por %p849_p10, %p848_p7 }
  0x9a   : > { %556 = vperm.xlu1 %804, %v531_v23  }
  0x9b   : > { %p851_p4 = pnand %p850_p2, %p844_p13 }
  0x9e   : > { %806 = vset.pattern.permute.xlu1 %v913_v7 }
  0x9f   : > { %600 = vperm.xlu1 %806, %v531_v23  }
  0xa3   : > { %807 = vset.pattern.permute.xlu1 %v923_v21 }
  0xa4   : > { %624 = vperm.xlu1 %807, %v621_v24  }
  0xab   : > { %v271_v25 = vpop.permute.xlu1 %270 }
  0xaf   : > { %v275_v26 = vpop.permute.xlu1 %274 }
  0xb3   : > { %v273_v27 = vpop.permute.xlu1 %272 }
  0xb4   : > { %v279_v28 = vsel %vm278_vm0, %v271_v25, %v273_v27  ;;  %v280_v29 = vsel %vm278_vm0, %v273_v27, %v275_v26 }
  0xb8   : > { %v264_v30 = vpop.permute.xlu0 %263 }
  0xb9   : > { %v285_v55 = vmul.f32 %v279_v28, %v264_v30  ;;  %v286_v56 = vmul.f32 %v280_v29, %v264_v30 }
  0xbc   : > { %v277_v31 = vpop.permute.xlu0 %276 }
  0xbd   : > { %v281_v51 = vsel %vm278_vm0, %v275_v26, %v277_v31 }
  0xbe   : > { %v287_v60 = vmul.f32 %v281_v51, %v264_v30 }
  0xc0   : > { %v304_v32 = vpop.permute.xlu0 %303 }
  0xc4   : > { %v297_v33 = vpop.permute.xlu1 %296  ;;  %v308_v34 = vpop.permute.xlu0 %307 }
  0xc8   : > { %v306_v35 = vpop.permute.xlu1 %305  ;;  %v1161_v36 = vpop.permute.xlu0 %329 }
  0xc9   : > { %v312_v53 = vsel %vm311_vm1, %v304_v32, %v306_v35  ;;  %v313_v54 = vsel %vm311_vm1, %v306_v35, %v308_v34 }
  0xca   : > { %v318_v0 = vmul.f32 %v312_v53, %v297_v33  ;;  %v319_v1 = vmul.f32 %v313_v54, %v297_v33  ;;  %v537_v54 = vlaneseq }
  0xcc   : > { %v310_v37 = vpop.permute.xlu1 %309  ;;  %v337_v38 = vpop.permute.xlu0 %336 }
  0xcd   : > { %v314_v57 = vsel %vm311_vm1, %v308_v34, %v310_v37 }
  0xce   : > { %v320_v3 = vmul.f32 %v314_v57, %v297_v33 }
  0xd0   : > { %v1163_v39 = vpop.permute.xlu1 %362  ;;  %v341_v40 = vpop.permute.xlu0 %340 }
  0xd4   : > { %v1165_v41 = vpop.permute.xlu0 %428 }
  0xd5   : > { %v1167_v42 = vpop.permute.xlu1 %395 }
  0xd8   : > { %v1169_v43 = vpop.permute.xlu0 %373 }
  0xd9   : > { %v339_v44 = vpop.permute.xlu1 %338 }
  0xda   : > { %v346_v18 = vsel %vm344_vm2, %v339_v44, %v341_v40 }
  0xdb   : > { %v352_v21 = vmul.f32 %v346_v18, %v1161_v36 }
  0xdc   : > { %v1171_v45 = vpop.permute.xlu0 %461 }
  0xdd   : > { %v343_v46 = vpop.permute.xlu1 %342 }
  0xde   : > { %v347_v24 = vsel %vm344_vm2, %v341_v40, %v343_v46 }
  0xdf   : > { %v353_v31 = vmul.f32 %v347_v24, %v1161_v36 }
  0xe0   : > { %v1173_v47 = vpop.permute.xlu0 %406 }
  0xe1   : > { %v370_v48 = vpop.permute.xlu1 %369 }
  0xe4   : > { %v1175_v49 = vpop.permute.xlu0 %494 }
  0xe5   : > { %v372_v50 = vpop.permute.xlu1 %371 }
  0xe6   : > { %v378_v22 = vsel %vm377_vm3, %v370_v48, %v372_v50  ;;  %v379_v25 = vsel %vm377_vm3, %v372_v50, %v1169_v43 }
  0xe7   : > { %v384_v29 = vmul.f32 %v378_v22, %v1163_v39  ;;  %v385_v32 = vmul.f32 %v379_v25, %v1163_v39 }
  0xe9   : > { %v376_v58 = vpop.permute.xlu1 %375  ;;  %v247_v59 = vpop.permute.xlu0 %246 }
  0xea   : > { %v252_v61 = vmul.f32 %v1075_v2, %v247_v59  ;;  %v253_v62 = vmul.f32 %v1090_v6, %v247_v59  ;;  %v254_v63 = vmul.f32 %v247_v59, %v243_v52  ;;  %v345_v2 = vsel %vm344_vm2, %v337_v38, %v339_v44 }
  0xeb   : > { %v351_v20 = vmul.f32 %v345_v2, %v1161_v36  ;;  %v380_v37 = vsel %vm377_vm3, %v1169_v43, %v376_v58 }
  0xec   : > { %v288_v4 = vadd.f32 %v285_v55, %v252_v61  ;;  %v289_v5 = vadd.f32 %v286_v56, %v253_v62  ;;  %v290_v7 = vadd.f32 %v287_v60, %v254_v63  ;;  %v386_v43 = vmul.f32 %v380_v37, %v1163_v39 }
  0xed   : > { %v403_v8 = vpop.permute.xlu1 %402  ;;  %v440_v14 = vpop.permute.xlu0 %439  ;;  %v538_v39 = vshrl.u32 %v537_v54, 7 }
  0xee   : > { %v321_v9 = vadd.f32 %v318_v0, %v288_v4  ;;  %v322_v10 = vadd.f32 %v319_v1, %v289_v5  ;;  %v323_v11 = vadd.f32 %v320_v3, %v290_v7 }
  0xf0   : > { %v354_v26 = vadd.f32 %v351_v20, %v321_v9  ;;  %v355_v27 = vadd.f32 %v352_v21, %v322_v10  ;;  %v356_v51 = vadd.f32 %v353_v31, %v323_v11 }
  0xf1   : > { %v405_v12 = vpop.permute.xlu1 %404  ;;  %v469_v16 = vpop.permute.xlu0 %468 }
  0xf2   : > { %v411_v28 = vsel %vm410_vm4, %v403_v8, %v405_v12  ;;  %v412_v30 = vsel %vm410_vm4, %v405_v12, %v1173_v47  ;;  %v387_v38 = vadd.f32 %v384_v29, %v354_v26  ;;  %v388_v46 = vadd.f32 %v385_v32, %v355_v27 }
  0xf3   : > { %v417_v40 = vmul.f32 %v411_v28, %v1167_v42  ;;  %v418_v48 = vmul.f32 %v412_v30, %v1167_v42  ;;  %v389_v63 = vadd.f32 %v386_v43, %v356_v51  ;;  %v605_v32 = vsub.s32 3, %v538_v39 }
  0xf5   : > { %v409_v13 = vpop.permute.xlu1 %408  ;;  %v473_v19 = vpop.permute.xlu0 %472  ;;  %v420_v57 = vadd.f32 %v417_v40, %v387_v38  ;;  %v421_v60 = vadd.f32 %v418_v48, %v388_v46 }
  0xf6   : > { %v413_v36 = vsel %vm410_vm4, %v1173_v47, %v409_v13 }
  0xf7   : > { %v419_v58 = vmul.f32 %v413_v36, %v1167_v42 }
  0xf9   : > { %v436_v15 = vpop.permute.xlu1 %435  ;;  %v1192_v33 = vpop.permute.xlu0 %525  ;;  %v422_v7 = vadd.f32 %v419_v58, %v389_v63 }
  0xfd   : > { %v438_v17 = vpop.permute.xlu1 %437  ;;  %v506_v61 = vpop.permute.xlu0 %505 }
  0xfe   : > { %v444_v34 = vsel %vm443_vm5, %v436_v15, %v438_v17  ;;  %v445_v44 = vsel %vm443_vm5, %v438_v17, %v440_v14 }
  0xff   : > { %v450_v52 = vmul.f32 %v444_v34, %v1165_v41  ;;  %v451_v55 = vmul.f32 %v445_v44, %v1165_v41 }
 0x101   : > { %v442_v6 = vpop.permute.xlu1 %441  ;;  %v453_v0 = vadd.f32 %v450_v52, %v420_v57  ;;  %v454_v3 = vadd.f32 %v451_v55, %v421_v60 }
 0x102   : > { %v446_v59 = vsel %vm443_vm5, %v440_v14, %v442_v6  ;;  %v539_v14 = vsub.s32 0, %v538_v39  ;;  %v561_v6 = vsub.s32 1, %v538_v39 }
 0x103   : > { %v452_v4 = vmul.f32 %v446_v59, %v1165_v41 }
 0x105   : > { %v471_v23 = vpop.permute.xlu1 %470  ;;  %v455_v15 = vadd.f32 %v452_v4, %v422_v7 }
 0x106   : > { %v477_v50 = vsel %vm476_vm6, %v469_v16, %v471_v23  ;;  %v478_v53 = vsel %vm476_vm6, %v471_v23, %v473_v19  ;;  %v535_v16 = vpop.permute.xlu0 %534 }
 0x107   : > { %v483_v47 = vmul.f32 %v477_v50, %v1171_v45  ;;  %v484_v62 = vmul.f32 %v478_v53, %v1171_v45 }
 0x109   : > { %v475_v35 = vpop.permute.xlu1 %474  ;;  %v486_v42 = vadd.f32 %v483_v47, %v453_v0  ;;  %v487_v10 = vadd.f32 %v484_v62, %v454_v3 }
 0x10a   : > { %v479_v1 = vsel %vm476_vm6, %v473_v19, %v475_v35  ;;  %v583_v19 = vsub.s32 2, %v538_v39  ;;  %v579_v28 = vpop.permute.xlu0 %578 }
 0x10b   : > { %v485_v11 = vmul.f32 %v479_v1, %v1171_v45 }
 0x10d   : > { %v502_v56 = vpop.permute.xlu1 %501  ;;  %v488_v20 = vadd.f32 %v485_v11, %v455_v15 }
 0x111   : > { %v504_v5 = vpop.permute.xlu1 %503 }
 0x112   : > { %v510_v8 = vsel %vm509_vm7, %v502_v56, %v504_v5  ;;  %v511_v9 = vsel %vm509_vm7, %v504_v5, %v506_v61 }
 0x113   : > { %v516_v12 = vmul.f32 %v510_v8, %v1175_v49  ;;  %v517_v13 = vmul.f32 %v511_v9, %v1175_v49 }
 0x115   : > { %v519_v17 = vadd.f32 %v516_v12, %v486_v42  ;;  %v520_v2 = vadd.f32 %v517_v13, %v487_v10  ;;  %v508_v41 = vpop.permute.xlu1 %507 }
 0x116   : > { %v512_v18 = vsel %vm509_vm7, %v506_v61, %v508_v41 }
 0x117   : > { %v528_v21 = vadd.f32 %v1192_v33, %v519_v17  ;;  %v529_v22 = vadd.f32 %v1192_v33, %v520_v2  ;;  %v518_v45 = vmul.f32 %v512_v18, %v1175_v49 }
 0x119   : > { %v521_v23 = vadd.f32 %v518_v45, %v488_v20  ;;  %v557_v24 = vpop.permute.xlu1 %556  ;;  %v540_v25 = vrot.slane %v528_v21, %v539_v14  ;;  %v544_v26 = vrot.slane %v529_v22, %v539_v14  ;;  %v562_v27 = vrot.slane %v528_v21, %v561_v6 }
 0x11a   : > { %v566_v29 = vrot.slane %v529_v22, %v561_v6  ;;  %v584_v30 = vrot.slane %v528_v21, %v583_v19  ;;  %v588_v31 = vrot.slane %v529_v22, %v583_v19  ;;  %v606_v53 = vrot.slane %v528_v21, %v605_v32 }
 0x11b   : > { %v530_v34 = vadd.f32 %v1192_v33, %v521_v23  ;;  %v549_v35 = vmul.f32 %v540_v25, %v535_v16  ;;  %v550_v37 = vmul.f32 %v544_v26, %v535_v16  ;;  %v571_v38 = vmul.f32 %v562_v27, %v557_v24 }
 0x11c   : > { %v572_v40 = vmul.f32 %v566_v29, %v557_v24  ;;  %v593_v44 = vmul.f32 %v584_v30, %v579_v28  ;;  %v594_v51 = vmul.f32 %v588_v31, %v579_v28  ;;  %v610_v54 = vrot.slane %v529_v22, %v605_v32 }
 0x11d   : > { %v548_v46 = vrot.slane %v530_v34, %v539_v14  ;;  %v570_v49 = vrot.slane %v530_v34, %v561_v6  ;;  %v574_v48 = vadd.f32 %v571_v38, %v549_v35  ;;  %v592_v36 = vrot.slane %v530_v34, %v583_v19 }
 0x11e   : > { %v575_v50 = vadd.f32 %v572_v40, %v550_v37  ;;  %v601_v52 = vpop.permute.xlu1 %600  ;;  %v614_v33 = vrot.slane %v530_v34, %v605_v32 }
 0x11f   : > { %v551_v43 = vmul.f32 %v548_v46, %v535_v16  ;;  %v573_v55 = vmul.f32 %v570_v49, %v557_v24  ;;  %v596_v56 = vadd.f32 %v593_v44, %v574_v48  ;;  %v615_v58 = vmul.f32 %v606_v53, %v601_v52 }
 0x120   : > { %v597_v57 = vadd.f32 %v594_v51, %v575_v50  ;;  %v616_v59 = vmul.f32 %v610_v54, %v601_v52  ;;  %v595_v60 = vmul.f32 %v592_v36, %v579_v28  ;;  %v617_v0 = vmul.f32 %v614_v33, %v601_v52 }
 0x121   : > { %v576_v47 = vadd.f32 %v573_v55, %v551_v43  ;;  %v618_v61 = vadd.f32 %v615_v58, %v596_v56 }
 0x122   : > { %v619_v62 = vadd.f32 %v616_v59, %v597_v57 }
 0x123   : > { %v598_v63 = vadd.f32 %v595_v60, %v576_v47  ;;  %v625_v1 = vpop.permute.xlu1 %624 }
 0x124   : > { %v627_v39 = vadd.f32 %v625_v1, %v618_v61  ;;  %v628_v3 = vadd.f32 %v625_v1, %v619_v62 }
 0x125   : > { %v620_v4 = vadd.f32 %v617_v0, %v598_v63 }
 0x126   : > { %630 = vst [vmem:[%s240_s26] sm:$0xff] %v627_v39  ;;  %631 = vst [vmem:[%s240_s26 + $0x8] sm:$0xff] %v628_v3 }
 0x127   : > { %v629_v5 = vadd.f32 %v625_v1, %v620_v4 }
 0x129   : > { %632 = vst [vmem:[%s240_s26 + $0x10] sm:$0xff] %v629_v5 }
 0x12a   : > { %854 = shalt.err (!%p851_p4)
}
 0x12b   : > { %s855_s13 = scalar_lea.hbm %s1228_s7, 384  ;;  %s859_s15 = scalar_lea.hbm %s1277_s5, 768 }
 0x12c   : > { %p856_p5 = scmp.ne.s32.totalorder %s1228_s7, %s855_s13  ;;  %p860_p0 = scmp.lt.u32.totalorder %s1228_s7, %s1277_s5 }
 0x12d   : > { %p861_p1 = scmp.lt.u32.totalorder %s859_s15, %s855_s13  ;;  %p863_p6 = scmp.lt.u32.totalorder %s855_s13, %s1228_s7 }
 0x12e   : > { %p857_p8 = pnand %p856_p5, %p1286_p11 }
 0x12f   : > { %p862_p3 = por %p861_p1, %p860_p0 }
 0x130   : > { %p858_p9 = pneg %p857_p8 }
 0x131   : > { %p864_p12 = por %p863_p6, %p862_p3 }
 0x133   : > { %p865_p13 = pnand %p864_p12, %p858_p9 }
 0x135   : > { %868 = shalt.err (!%p865_p13)
}
 0x136   : > { %734 = dma.vmem_to_hbm [thread:$0]  (%p1286_p11), %s1230_s28, 384, %s1228_s7, %s634_s22  }
 0x137 PF: > { %s660_s16 = sand.u32 1, %s895_s18   ;;  %p1287_p7 = scmp.ne.s32.totalorder %s1282_s6, 0 }
 0x138   : > { %p1288_p10 = scmp.ge.s32.totalorder %s907_s21, 2  ;;  %s661_s26 = scalar_lea.sflag [#allocation4], %s660_s16 }
 0x13a   : > { %p741_p2 = pnand %p1288_p10, %p1287_p7 }
 0x13c   : > { %890 = dma.done.wait (!%p741_p2), %s661_s26, 384  }
 0x13d   : > { %892 = vsyncadd (!%p741_p2), %s661_s26, 4294966912  ;;  %p18_p4 = scmp.ge.s32.totalorder %s983_s24, 4   ;;  %s1289_s18 = smov %s899_s19 }
 0x13e   : > { %s1290_s19 = smov %s903_s20  ;;  %s1291_s20 = smov %s995_s27 }
 0x13f   : > { %s1292_s21 = smov %s983_s24  ;;  %20 = sbr.rel (!%p18_p4) target bundleno = 5 (0x5), region = 85 }
 0x146   :  { %666 = vsyncpa [#allocation3], 1 }
 0x147   :  { %668 = vsyncpa [#allocation3 + $0x1], 1 }
 0x148   :  { %669 = vsyncpa [#allocation4], 1 }
 0x149   :  { %671 = vsyncpa [#allocation4 + $0x1], 1 }

</bundles_post_ra>
